<compile_context>
chip_gen: v6e
topology: v6e:2x2x1
jax: 0.10.0
libtpu: 0.0.40
codegen_flags: <defaults>
</compile_context>

<pallas_src>
import functools

import jax
import jax.numpy as jnp
from jax import lax
from jax.experimental import pallas as pl
from jax.experimental.pallas import tpu as pltpu


# ----------------------------------------------------------------------------
# Pallas kernel: lane-dense fused matmul + bias for the k=2 / stride=2 deconv
#   y[oc*4 + ki*2 + kj, p] = sum_ic W[ic, oc, ki, kj] * x2[b, ic, p] + bias[oc]
# ----------------------------------------------------------------------------
def _deconv_mm_kernel(w_ref, x_ref, b_ref, o_ref, *, mxu_dtype):
    # w_ref: [tr, Cin]   resident weight row-tile (compute dtype)
    # x_ref: [Cin, tn]   lane-dense activation tile (input dtype)
    # b_ref: [tr, 1]     f32 bias column
    # o_ref: [tr, tn]    lane-dense output stores
    x = x_ref[...].astype(mxu_dtype)        # in-kernel cast (no extra HBM pass)
    acc = jnp.dot(w_ref[...], x, preferred_element_type=jnp.float32)
    o_ref[...] = (acc + b_ref[...]).astype(o_ref.dtype)


def _round_down(a, m):
    return (a // m) * m


def _vmem_budgets():
    """(tile budget, vmem_limit_bytes) — generation aware, safe fallback."""
    try:
        cap = pltpu.get_tpu_info().vmem_capacity_bytes
    except Exception:
        cap = 64 * 1024 * 1024                      # assume v7x-like if unknown
    if cap >= 128 * 1024 * 1024:                    # v5e / v6e: 128 MiB physical
        return 56 * 1024 * 1024, 96 * 1024 * 1024
    return 20 * 1024 * 1024, 32 * 1024 * 1024       # v7x: 64 MiB physical


def _choose_tiles(batch, n, cin, cout4, x_item, o_item, w_item, budget):
    # Weight-residency guard: tile Cout*4 rows so the double-buffered resident
    # weight tile stays well inside the scoped-VMEM budget.
    tr = cout4
    while tr % 16 == 0 and 2 * tr * cin * w_item > budget // 3:
        tr //= 2
    w_tile_bytes = tr * cin * w_item

    # Lane tile: double-buffered x/out tiles + the f32 accumulator.
    if n <= 128:
        tn = n                                       # full lane dim (allowed)
    else:
        per_lane = 2 * (cin * x_item + tr * o_item) + tr * 4
        avail = max(budget - 2 * w_tile_bytes, 2 * 1024 * 1024)
        tn = max(128, min(int(avail // per_lane), 8192))
        tn = _round_down(tn, 128)
        tn = max(128, min(tn, _round_down(n, 128)))
        if batch == 1 and n >= 256:
            # v7x: keep >=2 lane steps so "parallel" can split across both TCs
            # (with batch >= 2 the batch grid axis already provides this).
            tn = min(tn, max(128, _round_down(n // 2, 128)))
    return tr, tn


def _deconv_matmul(x_bcn, w_t, b_col, out_dtype, mxu_dtype):
    """x_bcn: [B, Cin, N] (free NCHW view), w_t: [Cout*4, Cin], b_col: [Cout*4,1] f32
       -> [B, Cout*4, N] in out_dtype."""
    batch, cin, n = x_bcn.shape
    cout4 = w_t.shape[0]

    budget, vmem_limit = _vmem_budgets()
    tr, tn = _choose_tiles(batch, n, cin, cout4,
                           x_bcn.dtype.itemsize, jnp.dtype(out_dtype).itemsize,
                           w_t.dtype.itemsize, budget)
    nr = cout4 // tr
    nl = pl.cdiv(n, tn)

    flops = 2 * batch * n * cin * cout4
    bytes_accessed = (batch * cin * n * x_bcn.dtype.itemsize
                      + cout4 * cin * w_t.dtype.itemsize
                      + cout4 * 4
                      + batch * cout4 * n * jnp.dtype(out_dtype).itemsize)

    kernel = functools.partial(_deconv_mm_kernel, mxu_dtype=mxu_dtype)
    return pl.pallas_call(
        kernel,
        out_shape=jax.ShapeDtypeStruct((batch, cout4, n), out_dtype),
        grid=(batch, nr, nl),
        in_specs=[
            # resident weight row-tile (constant across the inner lane axis)
            pl.BlockSpec((tr, cin), lambda b, r, l: (r, 0)),
            # activations: free NCHW view, squeezed batch dim, lane-dense loads
            pl.BlockSpec((pl.Squeezed(), cin, tn), lambda b, r, l: (b, 0, l)),
            # f32 bias column for this row-tile
            pl.BlockSpec((tr, 1), lambda b, r, l: (r, 0)),
        ],
        out_specs=pl.BlockSpec((pl.Squeezed(), tr, tn), lambda b, r, l: (b, r, l)),
        compiler_params=pltpu.CompilerParams(
            dimension_semantics=("parallel", "parallel", "parallel"),
            vmem_limit_bytes=vmem_limit,
        ),
        cost_estimate=pl.CostEstimate(flops=flops, transcendentals=0,
                                      bytes_accessed=bytes_accessed),
    )(w_t, x_bcn, b_col)


# ----------------------------------------------------------------------------
# Module-equivalent forward (NCHW in, NCHW out)
# ----------------------------------------------------------------------------
def up_forward(x1_nchw, x2_nchw, weight, bias, *, compute_dtype=None):
    """
    x1_nchw: [B, C1, H1, W1]
    x2_nchw: [B, Cin, H2, W2]
    weight:  [Cin, Cout, 2, 2]   (PyTorch ConvTranspose2d layout)
    bias:    [Cout]
    compute_dtype: None -> exact (input dtype, matches the PyTorch f32 module);
        pass jnp.bfloat16 on real TPUs to halve resident-weight VMEM / feed the
        MXU at bf16 rate (accumulation stays f32 either way).
    returns: [B, Cout + C1, H1, W1]
    """
    b, cin, h2, w2 = x2_nchw.shape
    _, c1, h1, w1 = x1_nchw.shape
    cout = weight.shape[1]
    cout4 = cout * 4
    n = h2 * w2
    out_dtype = x2_nchw.dtype
    mxu_dtype = jnp.dtype(out_dtype) if compute_dtype is None else jnp.dtype(compute_dtype)

    # Free NCHW view [B, Cin, H2*W2] — no transpose, no wrapper-side cast pass.
    x_bcn = x2_nchw.reshape(b, cin, n)

    # [Cin, Cout, 2, 2] -> [Cout*4, Cin]; row index = oc*4 + ki*2 + kj (tiny).
    w_t = jnp.transpose(weight.reshape(cin, cout4)).astype(mxu_dtype)
    b_col = jnp.repeat(bias, 4).reshape(cout4, 1).astype(jnp.float32)

    # Hot path: batched lane-dense MXU matmul (f32 accumulation + f32 bias add).
    y = _deconv_matmul(x_bcn, w_t, b_col, out_dtype, mxu_dtype)   # [B, Cout*4, N]

    # 2x scatter onto the upsampled NCHW grid (stride == kernel => no overlap).
    # TODO(synk): fold this (ki,kj) interleave into the kernel output to save a pass.
    y = y.reshape(b, cout, 2, 2, h2, w2)                          # [B,Cout,ki,kj,H2,W2]
    x2_up = jnp.transpose(y, (0, 1, 4, 2, 5, 3)).reshape(b, cout, 2 * h2, 2 * w2)

    # F.pad (negative diffs crop) + channel concat fused into one pre-allocated
    # output buffer (single write pass instead of materialized pad + concat).
    diff_y = h1 - 2 * h2
    diff_x = w1 - 2 * w2
    top, bottom = diff_y // 2, diff_y - diff_y // 2
    left, right = diff_x // 2, diff_x - diff_x // 2
    x2_up = x2_up[:, :,
                  max(0, -top): 2 * h2 - max(0, -bottom),
                  max(0, -left): 2 * w2 - max(0, -right)]

    out = jnp.zeros((b, cout + c1, h1, w1), out_dtype)
    out = lax.dynamic_update_slice(out, x2_up.astype(out_dtype),
                                   (0, 0, max(0, top), max(0, left)))
    out = lax.dynamic_update_slice(out, x1_nchw.astype(out_dtype), (0, cout, 0, 0))
    return out


if __name__ == "__main__":
    key = jax.random.PRNGKey(0)
    k_w, k_b, k_x1, k_x2 = jax.random.split(key, 4)

    # Small U-Net-like shapes: in_ch=8 -> out_ch=4, x2 at ~half resolution of x1.
    B, in_ch, out_ch = 2, 8, 4
    H2, W2 = 8, 8
    H1, W1 = 17, 17            # exercises the F.pad path (diff = 1)
    C1 = out_ch

    weight = jax.random.normal(k_w, (in_ch, out_ch, 2, 2), jnp.float32) * 0.1
    bias = jax.random.normal(k_b, (out_ch,), jnp.float32) * 0.1
    x1 = jax.random.normal(k_x1, (B, C1, H1, W1), jnp.float32)
    x2 = jax.random.normal(k_x2, (B, in_ch, H2, W2), jnp.float32)

    out = jax.jit(up_forward)(x1, x2, weight, bias)
    jax.block_until_ready(out)
    assert out.shape == (B, out_ch + C1, H1, W1), out.shape

    # Pure-JAX f32 reference (exact path -> tight tolerance).
    deconv = jnp.einsum('bcij,cokl->boikjl', x2, weight).reshape(
        B, out_ch, 2 * H2, 2 * W2) + bias[None, :, None, None]
    dY, dX = H1 - 2 * H2, W1 - 2 * W2
    deconv = jnp.pad(deconv, ((0, 0), (0, 0),
                              (dY // 2, dY - dY // 2), (dX // 2, dX - dX // 2)))
    ref = jnp.concatenate([deconv, x1], axis=1)
    err = float(jnp.max(jnp.abs(out - ref)))
    assert err < 1e-3, f"max abs error {err}"

    print("KERNEL_OK")
</pallas_src>

<mosaic_0001>
module attributes {stable_mosaic.version = 11 : i64} {
  func.func @_deconv_mm_kernel(%arg0: i32, %arg1: i32, %arg2: i32, %arg3: memref<16x8xf32, #tpu.memory_space<vmem>>, %arg4: memref<1x8x64xf32, #tpu.memory_space<vmem>>, %arg5: memref<16x1xf32, #tpu.memory_space<vmem>>, %arg6: memref<1x16x64xf32, #tpu.memory_space<vmem>>) attributes {dimension_semantics = [#tpu.dimension_semantics<parallel>, #tpu.dimension_semantics<parallel>, #tpu.dimension_semantics<parallel>], iteration_bounds = array<i64: 2, 1, 1>, scalar_prefetch = 0 : i64, scratch_operands = 0 : i64, tpu.core_type = #tpu.core_type<tc>, window_params = [{transform_indices = @transform_0, window_bounds = array<i64: 16, 8>}, {transform_indices = @transform_1, window_bounds = array<i64: 1, 8, 64>}, {transform_indices = @transform_2, window_bounds = array<i64: 16, 1>}, {transform_indices = @transform_3, window_bounds = array<i64: 1, 16, 64>}]} {
    %c0 = arith.constant 0 : index
    %c0_0 = arith.constant 0 : index
    %c0_1 = arith.constant 0 : index
    %0 = vector.load %arg4[%c0, %c0_0, %c0_1] : memref<1x8x64xf32, #tpu.memory_space<vmem>>, vector<1x8x64xf32>
    %1 = vector.shape_cast %0 : vector<1x8x64xf32> to vector<8x64xf32>
    %c0_2 = arith.constant 0 : index
    %c0_3 = arith.constant 0 : index
    %2 = vector.load %arg3[%c0_2, %c0_3] : memref<16x8xf32, #tpu.memory_space<vmem>>, vector<16x8xf32>
    %cst = arith.constant dense<0.000000e+00> : vector<16x64xf32>
    %3 = tpu.matmul %2, %1, %cst {dimension_numbers = #tpu.dot_dimension_numbers<[1], [0], [0], [1], [0, 0, 1, 1], [], []>} : vector<16x8xf32>, vector<8x64xf32>, vector<16x64xf32> -> vector<16x64xf32>
    %c0_4 = arith.constant 0 : index
    %c0_5 = arith.constant 0 : index
    %4 = vector.load %arg5[%c0_4, %c0_5] : memref<16x1xf32, #tpu.memory_space<vmem>>, vector<16x1xf32>
    %5 = vector.broadcast %4 : vector<16x1xf32> to vector<16x64xf32>
    %6 = arith.addf %3, %5 : vector<16x64xf32>
    %c0_6 = arith.constant 0 : index
    %c0_7 = arith.constant 0 : index
    %c0_8 = arith.constant 0 : index
    %7 = vector.load %arg6[%c0_6, %c0_7, %c0_8] : memref<1x16x64xf32, #tpu.memory_space<vmem>>, vector<1x16x64xf32>
    %8 = vector.shape_cast %7 : vector<1x16x64xf32> to vector<16x64xf32>
    %9 = vector.shape_cast %6 : vector<16x64xf32> to vector<1x16x64xf32>
    tpu.vector_store %arg6[%c0_6, %c0_7, %c0_8], %9 {strides = array<i32>} : memref<1x16x64xf32, #tpu.memory_space<vmem>>, vector<1x16x64xf32>,
    return
  }
  func.func @transform_0(%arg0: i32, %arg1: i32, %arg2: i32) -> (i32, i32) {
    %c0_i32 = arith.constant 0 : i32
    %c0_i32_0 = arith.constant 0 : i32
    return %arg1, %c0_i32 : i32, i32
  }
  func.func @transform_1(%arg0: i32, %arg1: i32, %arg2: i32) -> (i32, i32, i32) {
    %c0_i32 = arith.constant 0 : i32
    %c0_i32_0 = arith.constant 0 : i32
    return %arg0, %c0_i32, %arg2 : i32, i32, i32
  }
  func.func @transform_2(%arg0: i32, %arg1: i32, %arg2: i32) -> (i32, i32) {
    %c0_i32 = arith.constant 0 : i32
    %c0_i32_0 = arith.constant 0 : i32
    return %arg1, %c0_i32 : i32, i32
  }
  func.func @transform_3(%arg0: i32, %arg1: i32, %arg2: i32) -> (i32, i32, i32) {
    %c0_i32 = arith.constant 0 : i32
    return %arg0, %arg1, %arg2 : i32, i32, i32
  }
}

</mosaic_0001>

<bundles_post_ra>
// kernel: up_forward.1
= control target key start
LH: loop header
LB: loop body
LE: loop exit
PB: predicated region body
PF: predicated region fallthrough
CT: control target
= control target key end

     0   :  { %s582_s12 = smov 0   ;;  %s584_s13 = smov 0   ;;  %s627_s0 = inlined_call_operand.vmem [shape: f32[16,8], index: 0, kind: input, shape index: {}]   ;;  %s628_s1 = inlined_call_operand.vmem [shape: f32[2,8,64], index: 1, kind: input, shape index: {}]   ;;  %s629_s2 = inlined_call_operand.vmem [shape: f32[16,1], index: 2, kind: input, shape index: {}]   ;;  %s630_s3 = inlined_call_operand.vmem [shape: f32[2,16,64], index: 3, kind: output, shape index: {}]  }
   0x1   :  { %s586_s14 = smov 0  }
   0x2 LB: > { %s32_s15 = sadd.s32 1, %s555_s13  ;;  %p494_p0 = scmp.ge.s32.totalorder %s559_s14, 1  ;;  %s559_s14 = sphi %s586_s14, %s13_s14   ;;  %s555_s13 = sphi %s584_s13, %s632_s13   ;;  %s551_s12 = sphi %s582_s12, %s631_s12  }
   0x3   : > { %p34_p1 = scmp.ge.s32.totalorder %s32_s15, 2  ;;  %p186_p2 = scmp.lt.s32.totalorder %s559_s14, 3 }
   0x5   : > { %s634_s15 = smov (%p34_p1, %s32_s15), 0  ;;  %p187_p3 = pnand %p494_p0, %p186_p2 }
   0x6   : > { %p235_p4 = scmp.lt.s32.totalorder (!%p187_p3), %s551_s12, 1 }
   0x7   : > { %190 = sbr.rel (%p187_p3) target bundleno = 216 (0xd8), region = 32 }
   0xc   : > { %v262_v0 = vld [vmem:[%s627_s0] sm:$0xff]  ;;  %vm276_vm0 = vcmask 64512   ;;  %v561_v2 = vmov 0   ;;  %s636_s12 = smov (!%p235_p4, %s551_s12), 1  ;;  %v265_v3 = vld [vmem:[%s629_s2 + $0x8] sm:$0xff]  ;;  %vm358_vm1 = vcmask 523264  }
   0xd   : > { %v264_v1 = vld [vmem:[%s629_s2] sm:$0xff]  ;;  %508 = vmatprep.mubr.msk.f32.mxu0 %vm276_vm0, %v262_v0  ;;  %536 = vset.pattern.permute.xlu0 %v561_v2  ;;  %s495_s22 = sshll.u32 %s636_s12, 3  ;;  %v263_v5 = vld [vmem:[%s627_s0 + $0x8] sm:$0xff]  ;;  %s502_s28 = sshll.u32 %s636_s12, 4 }
   0xe   : > { %268 = vperm.xlu0 %536, %v264_v1   ;;  %s241_s25 = scalar_lea.vmem %s628_s1, %s495_s22  ;;  %s259_s4 = scalar_lea.vmem %s630_s3, %s502_s28 }
   0xf   : > { %v261_v4 = vld [vmem:[%s241_s25] sm:$0xff] }
  0x10   : > { %506 = vmatprep.subr.mxu0 %v261_v4 }
  0x11   : > { %507 = vmatpush3.msra.mxu0 %v261_v4 }
  0x12   : > { %273 = vperm.xlu0 %536, %v265_v3   ;;  %509 = vmatmul.mubr.msk.f32.vlgmr.msra.gmra.mxu0 %vm276_vm0, %v263_v5 }
  0x89   : > { %v269_v6 = vpop.permute.xlu0 %268 }
  0x8d   : > { %v274_v7 = vpop.permute.xlu0 %273 }
  0xd2   : > { %v510_v8 = vpop.f32.mrf.mxu0 }
  0xd3   : > { %v355_v9 = vadd.f32 %v510_v8, %v274_v7 }
  0xd4   : > { %v349_v10 = vpop.f32.mrf.mxu0 }
  0xd5   : > { %360 = vst.msk [vmem:[%s259_s4 + $0x8] sm:$0xff] %vm358_vm1, %v355_v9  ;;  %v350_v11 = vadd.f32 %v349_v10, %v269_v6 }
  0xd7   : > { %359 = vst.msk [vmem:[%s259_s4] sm:$0xff] %vm358_vm1, %v350_v11 }
  0xd8 PF: > { %s13_s14 = sadd.s32 1, %s559_s14   ;;  %s631_s12 = smov %s555_s13 }
  0xd9   : > { %p10_p5 = scmp.ge.s32.totalorder %s13_s14, 4   ;;  %s632_s13 = smov %s634_s15 }
  0xdb   :  { %12 = sbr.rel (!%p10_p5) target bundleno = 2 (0x2), region = 68 }

</bundles_post_ra>
